<compile_context>
chip_gen: v5e
topology: v5e:2x2
jax: 0.10.0
libtpu: 0.0.40
codegen_flags: <defaults>
</compile_context>

<pallas_src>
from functools import partial

import jax
import jax.numpy as jnp
from jax.experimental import pallas as pl
from jax.experimental.pallas import tpu as pltpu

LANE = 128
SUB = 8


def _round_up(x, m):
    return (x + m - 1) // m * m


def _gen_tiling():
    """Generation-aware spatial-strip target and VMEM limit."""
    try:
        vmem_cap = pltpu.get_tpu_info().vmem_capacity_bytes
    except Exception:
        vmem_cap = 64 * 1024 * 1024
    if vmem_cap >= 96 * 1024 * 1024:           # v5e / v6e: 128 MiB physical VMEM
        return 1024, 80 * 1024 * 1024
    return 512, 44 * 1024 * 1024               # v7x: 64 MiB physical, leave headroom


def conv_pool_kernel(p_ref, wk_ref, pooled_ref, *, hw):
    """3x3 conv (one im2col MXU matmul) + ReLU + global-average-pool accumulate.

    p_ref:      (1, TM, K)     bf16  im2col patch strip of one image (K = 9*Cin)
    wk_ref:     (K, C_pad)     bf16  reshaped conv weight (lane-padded channels)
    pooled_ref: (1, 1, C_pad)  f32   per-image pooled features (resident over s)
    hw:         static int, true H*W (mean divisor)
    """
    s = pl.program_id(1)

    @pl.when(s == 0)
    def _():
        pooled_ref[...] = jnp.zeros_like(pooled_ref)

    # Conv as a single MXU matmul (bf16 in, f32 accumulate) + ReLU in f32.
    feat = jnp.dot(p_ref[0], wk_ref[...], preferred_element_type=jnp.float32)
    feat = jnp.maximum(feat, 0.0)                                # (TM, C_pad) f32

    # Partial pool: f32 sublane reduction (XLU) — zero-padded rows contribute 0.
    part = jnp.sum(feat, axis=0, keepdims=True)                  # (1, C_pad)
    pooled_ref[...] += part.reshape(pooled_ref.shape)

    @pl.when(s == pl.num_programs(1) - 1)
    def _():
        pooled_ref[...] = pooled_ref[...] * (1.0 / hw)


def embed_kernel(pooled_ref, we_ref, be_ref, out_ref):
    """Batched Linear head: out = pooled @ We + be (single invocation, all f32)."""
    out_ref[...] = (
        jnp.dot(pooled_ref[...], we_ref[...], preferred_element_type=jnp.float32)
        + be_ref[...])


def _im2col_3x3_same(x_nhwc):
    """(N, H, W, C) -> (N, H*W, 9*C) patches for a 3x3 'same' conv (zero borders)."""
    n, h, w, c = x_nhwc.shape
    xp = jnp.pad(x_nhwc, ((0, 0), (1, 1), (1, 1), (0, 0)))
    cols = [xp[:, kh:kh + h, kw:kw + w, :] for kh in range(3) for kw in range(3)]
    return jnp.concatenate(cols, axis=-1).reshape(n, h * w, 9 * c)


def encoder_cnn_forward(images_nchw, conv_w, embed_w, embed_b):
    """images_nchw: (N, Cin, H, W) f32 -> (N, embed_size) f32.

    conv_w:  (3, 3, Cin, Cmid) HWIO conv weight (backbone stand-in)
    embed_w: (Cmid, embed_size)  (transposed PyTorch nn.Linear weight)
    embed_b: (embed_size,)
    """
    N, Cin, H, W = images_nchw.shape
    Cmid = conv_w.shape[-1]
    E = embed_w.shape[-1]
    HW = H * W
    K = 9 * Cin

    C_pad = max(_round_up(Cmid, LANE), LANE)
    E_pad = max(_round_up(E, LANE), LANE)

    tm_target, vmem_limit = _gen_tiling()
    TM = min(_round_up(HW, SUB), tm_target)          # spatial row-strip size
    HW_pad = _round_up(HW, TM)                       # cdiv-style strips w/ zero tail
    S = HW_pad // TM

    # NCHW -> NHWC, bf16 activations, im2col patches at TRUE K (no lane padding).
    x = jnp.transpose(images_nchw, (0, 2, 3, 1)).astype(jnp.bfloat16)
    patches = _im2col_3x3_same(x)                                # (N, HW, K)
    if HW_pad != HW:
        patches = jnp.pad(patches, ((0, 0), (0, HW_pad - HW), (0, 0)))

    wk = conv_w.astype(jnp.bfloat16).reshape(K, Cmid)
    wk = jnp.pad(wk, ((0, 0), (0, C_pad - Cmid)))                # (K, C_pad)

    # Kernel 1: conv + ReLU + global average pool (batch axis parallel).
    pooled = pl.pallas_call(
        partial(conv_pool_kernel, hw=HW),
        out_shape=jax.ShapeDtypeStruct((N, 1, C_pad), jnp.float32),
        grid=(N, S),
        in_specs=[
            pl.BlockSpec((1, TM, K), lambda n, s: (n, s, 0)),
            pl.BlockSpec((K, C_pad), lambda n, s: (0, 0)),
        ],
        out_specs=pl.BlockSpec((1, 1, C_pad), lambda n, s: (n, 0, 0)),
        compiler_params=pltpu.CompilerParams(
            dimension_semantics=("parallel", "arbitrary"),
            vmem_limit_bytes=vmem_limit),
    )(patches, wk)

    pooled2d = pooled.reshape(N, C_pad)

    # Kernel 2: tiny batched embed Linear (frozen-weight bf16 rounding as in ref).
    we = embed_w.astype(jnp.bfloat16).astype(jnp.float32)
    we = jnp.pad(we, ((0, C_pad - Cmid), (0, E_pad - E)))        # (C_pad, E_pad)
    be = jnp.pad(embed_b.astype(jnp.float32).reshape(1, E),
                 ((0, 0), (0, E_pad - E)))                       # (1, E_pad)

    out = pl.pallas_call(
        embed_kernel,
        out_shape=jax.ShapeDtypeStruct((N, E_pad), jnp.float32),
    )(pooled2d, we, be)

    return out[:, :E]


def encoder_cnn_reference(images_nchw, conv_w, embed_w, embed_b):
    """Pure-JAX reference (same bf16-rounded parameters, f32 pooling/embed math)."""
    x = jnp.transpose(images_nchw, (0, 2, 3, 1)).astype(jnp.bfloat16)
    w = conv_w.astype(jnp.bfloat16)
    y = jax.lax.conv_general_dilated(
        x, w, window_strides=(1, 1), padding="SAME",
        dimension_numbers=("NHWC", "HWIO", "NHWC"),
        preferred_element_type=jnp.float32)
    y = jnp.maximum(y, 0.0)
    pooled = jnp.mean(y, axis=(1, 2))                            # (N, Cmid) f32
    we = embed_w.astype(jnp.bfloat16).astype(jnp.float32)
    return pooled @ we + embed_b.astype(jnp.float32)


if __name__ == "__main__":
    # Small shapes consistent with the module's forward:
    # images (batch, 3, H, W); Cmid stands in (lane-aligned) for resnet.fc.in_features.
    N, Cin, H, W = 2, 3, 16, 16
    Cmid = 128            # stand-in for 2048, lane-aligned
    embed_size = 128

    key = jax.random.PRNGKey(0)
    k_img, k_conv, k_ew, k_eb = jax.random.split(key, 4)

    images = jax.random.normal(k_img, (N, Cin, H, W), dtype=jnp.float32)
    conv_w = jax.random.normal(k_conv, (3, 3, Cin, Cmid), dtype=jnp.float32) * 0.05
    # PyTorch nn.Linear weight is (out_features, in_features); stored transposed here.
    embed_w = jax.random.normal(k_ew, (Cmid, embed_size), dtype=jnp.float32) * 0.05
    embed_b = jax.random.normal(k_eb, (embed_size,), dtype=jnp.float32) * 0.01

    out = jax.block_until_ready(encoder_cnn_forward(images, conv_w, embed_w, embed_b))
    ref = encoder_cnn_reference(images, conv_w, embed_w, embed_b)

    assert out.shape == (N, embed_size), out.shape
    max_err = float(jnp.max(jnp.abs(out - ref)))
    assert jnp.allclose(out, ref, rtol=2e-2, atol=2e-2), max_err

    print("KERNEL_OK")
</pallas_src>

<mosaic_0001>
module attributes {stable_mosaic.version = 11 : i64} {
  func.func @conv_pool_kernel(%arg0: i32, %arg1: i32, %arg2: memref<1x256x27xbf16, #tpu.memory_space<vmem>>, %arg3: memref<27x128xbf16, #tpu.memory_space<vmem>>, %arg4: memref<1x1x128xf32, #tpu.memory_space<vmem>>) attributes {dimension_semantics = [#tpu.dimension_semantics<parallel>, #tpu.dimension_semantics<arbitrary>], iteration_bounds = array<i64: 2, 1>, scalar_prefetch = 0 : i64, scratch_operands = 0 : i64, tpu.core_type = #tpu.core_type<tc>, window_params = [{transform_indices = @transform_0, window_bounds = array<i64: 1, 256, 27>}, {pipeline_mode = #tpu.pipeline_mode<synchronous>, transform_indices = @transform_1, window_bounds = array<i64: 27, 128>}, {transform_indices = @transform_2, window_bounds = array<i64: 1, 1, 128>}]} {
    %c0_i32 = arith.constant 0 : i32
    %0 = arith.cmpi eq, %arg1, %c0_i32 : i32
    %1 = arith.extui %0 : i1 to i32
    %c0_i32_0 = arith.constant 0 : i32
    %2 = arith.cmpi ne, %1, %c0_i32_0 : i32
    scf.if %2 {
      %cst_15 = arith.constant 0.000000e+00 : f32
      %18 = vector.broadcast %cst_15 : f32 to vector<1x1x128xf32>
      %c0_16 = arith.constant 0 : index
      %c0_17 = arith.constant 0 : index
      %c0_18 = arith.constant 0 : index
      %19 = vector.load %arg4[%c0_16, %c0_17, %c0_18] : memref<1x1x128xf32, #tpu.memory_space<vmem>>, vector<1x1x128xf32>
      tpu.vector_store %arg4[%c0_16, %c0_17, %c0_18], %18 {strides = array<i32>} : memref<1x1x128xf32, #tpu.memory_space<vmem>>, vector<1x1x128xf32>,
    } else {
    }
    %c0 = arith.constant 0 : index
    %c0_1 = arith.constant 0 : index
    %c0_2 = arith.constant 0 : index
    %3 = vector.load %arg2[%c0, %c0_1, %c0_2] : memref<1x256x27xbf16, #tpu.memory_space<vmem>>, vector<1x256x27xbf16>
    %4 = vector.shape_cast %3 : vector<1x256x27xbf16> to vector<256x27xbf16>
    %c0_3 = arith.constant 0 : index
    %c0_4 = arith.constant 0 : index
    %5 = vector.load %arg3[%c0_3, %c0_4] : memref<27x128xbf16, #tpu.memory_space<vmem>>, vector<27x128xbf16>
    %cst = arith.constant dense<0.000000e+00> : vector<256x128xf32>
    %6 = tpu.matmul %4, %5, %cst {dimension_numbers = #tpu.dot_dimension_numbers<[1], [0], [0], [1], [0, 0, 1, 1], [], []>} : vector<256x27xbf16>, vector<27x128xbf16>, vector<256x128xf32> -> vector<256x128xf32>
    %cst_5 = arith.constant 0.000000e+00 : f32
    %7 = vector.broadcast %cst_5 : f32 to vector<256x128xf32>
    %8 = arith.maximumf %6, %7 : vector<256x128xf32>
    %cst_6 = arith.constant dense<0.000000e+00> : vector<128xf32>
    %9 = vector.multi_reduction <add>, %8, %cst_6 [0] : vector<256x128xf32> to vector<128xf32>
    %10 = vector.shape_cast %9 : vector<128xf32> to vector<1x128xf32>
    %c0_7 = arith.constant 0 : index
    %c0_8 = arith.constant 0 : index
    %c0_9 = arith.constant 0 : index
    %11 = vector.load %arg4[%c0_7, %c0_8, %c0_9] : memref<1x1x128xf32, #tpu.memory_space<vmem>>, vector<1x1x128xf32>
    %12 = vector.shape_cast %10 : vector<1x128xf32> to vector<1x1x128xf32>
    %13 = arith.addf %11, %12 : vector<1x1x128xf32>
    %c0_10 = arith.constant 0 : index
    %c0_11 = arith.constant 0 : index
    %c0_12 = arith.constant 0 : index
    %14 = vector.load %arg4[%c0_10, %c0_11, %c0_12] : memref<1x1x128xf32, #tpu.memory_space<vmem>>, vector<1x1x128xf32>
    tpu.vector_store %arg4[%c0_10, %c0_11, %c0_12], %13 {strides = array<i32>} : memref<1x1x128xf32, #tpu.memory_space<vmem>>, vector<1x1x128xf32>,
    %c0_i32_13 = arith.constant 0 : i32
    %15 = arith.cmpi eq, %arg1, %c0_i32_13 : i32
    %16 = arith.extui %15 : i1 to i32
    %c0_i32_14 = arith.constant 0 : i32
    %17 = arith.cmpi ne, %16, %c0_i32_14 : i32
    scf.if %17 {
      %c0_15 = arith.constant 0 : index
      %c0_16 = arith.constant 0 : index
      %c0_17 = arith.constant 0 : index
      %18 = vector.load %arg4[%c0_15, %c0_16, %c0_17] : memref<1x1x128xf32, #tpu.memory_space<vmem>>, vector<1x1x128xf32>
      %cst_18 = arith.constant 3.906250e-03 : f32
      %19 = vector.broadcast %cst_18 : f32 to vector<1x1x128xf32>
      %20 = arith.mulf %18, %19 : vector<1x1x128xf32>
      %c0_19 = arith.constant 0 : index
      %c0_20 = arith.constant 0 : index
      %c0_21 = arith.constant 0 : index
      %21 = vector.load %arg4[%c0_19, %c0_20, %c0_21] : memref<1x1x128xf32, #tpu.memory_space<vmem>>, vector<1x1x128xf32>
      tpu.vector_store %arg4[%c0_19, %c0_20, %c0_21], %20 {strides = array<i32>} : memref<1x1x128xf32, #tpu.memory_space<vmem>>, vector<1x1x128xf32>,
    } else {
    }
    return
  }
  func.func @transform_0(%arg0: i32, %arg1: i32) -> (i32, i32, i32) {
    %c0_i32 = arith.constant 0 : i32
    %c0_i32_0 = arith.constant 0 : i32
    return %arg0, %arg1, %c0_i32 : i32, i32, i32
  }
  func.func @transform_1(%arg0: i32, %arg1: i32) -> (i32, i32) {
    %c0_i32 = arith.constant 0 : i32
    %c0_i32_0 = arith.constant 0 : i32
    %c0_i32_1 = arith.constant 0 : i32
    return %c0_i32, %c0_i32_0 : i32, i32
  }
  func.func @transform_2(%arg0: i32, %arg1: i32) -> (i32, i32, i32) {
    %c0_i32 = arith.constant 0 : i32
    %c0_i32_0 = arith.constant 0 : i32
    %c0_i32_1 = arith.constant 0 : i32
    return %arg0, %c0_i32, %c0_i32_0 : i32, i32, i32
  }
}

</mosaic_0001>

<bundles_post_ra>
// kernel: tpu_custom_call.1
= control target key start
LH: loop header
LB: loop body
LE: loop exit
PB: predicated region body
PF: predicated region fallthrough
CT: control target
= control target key end

     0   :  { %7 = vsyncpa [#allocation3], 0  ;;  %s1041_s0 = inlined_call_operand.vmem [shape: bf16[2,256,27], index: 0, kind: input, shape index: {}]   ;;  %s1042_s1 = inlined_call_operand.vmem [shape: bf16[27,128], index: 1, kind: input, shape index: {}]   ;;  %s1043_s2 = inlined_call_operand.hbm [shape: f32[2,1,128], index: 2, kind: output, shape index: {}]  }
   0x1   :  { %9 = vsyncpa [#allocation3 + $0x1], 0  ;;  %s883_s9 = smov 0   ;;  %s885_s10 = smov 0  }
   0x2   :  { %s887_s11 = smov 0   ;;  %s889_s12 = smov 0  }
   0x3   :  { %s891_s13 = smov 0   ;;  %s893_s14 = smov 0  }
   0x4 LB: > { %s607_s15 = sadd.s32 4294967295, %s864_s14   ;;  %s608_s16 = sadd.s32 4294967294, %s864_s14   ;;  %s864_s14 = sphi %s893_s14, %s15_s14   ;;  %s860_s13 = sphi %s891_s13, %s1050_s13   ;;  %s856_s12 = sphi %s889_s12, %s1049_s12   ;;  %s852_s11 = sphi %s887_s11, %s1048_s11   ;;  %s848_s10 = sphi %s885_s10, %s1047_s10   ;;  %s844_s9 = sphi %s883_s9, %s1046_s9  }
   0x5   : > { %s27_s17 = sadd.s32 1, %s860_s13  ;;  %s83_s18 = sadd.s32 1, %s852_s11 }
   0x6   : > { %p29_p0 = scmp.ge.s32.totalorder %s27_s17, 2  ;;  %p93_p1 = scmp.ne.s32.totalorder %s852_s11, %s848_s10 }
   0x7   : > { %p94_p2 = scmp.eq.s32.totalorder %s607_s15, 1  ;;  %p99_p3 = scmp.ne.s32.totalorder %s848_s10, %s844_s9 }
   0x8   : > { %s1052_s17 = smov (%p29_p0, %s27_s17), 0  ;;  %p100_p5 = scmp.eq.s32.totalorder %s608_s16, 1 }
   0x9   : > { %p923_p4 = por %p94_p2, %p93_p1  ;;  %s80_s20 = ssub.s32 %s860_s13, %s1052_s17 }
   0xa   : > { %p611_p6 = scmp.ge.s32.totalorder %s864_s14, 1  ;;  %p81_p7 = scmp.eq.s32.totalorder %s80_s20, 0 }
   0xb   : > { %p930_p8 = por %p100_p5, %p99_p3  ;;  %p134_p9 = scmp.lt.s32.totalorder %s864_s14, 3 }
   0xc   : > { %s936_s22 = scalar_select %p81_p7, %s852_s11, %s83_s18  }
   0xd   : > { %p135_p10 = pnand %p611_p6, %p134_p9 }
   0xe   : > { %p160_p11 = scmp.lt.s32.totalorder (!%p135_p10), %s856_s12, 1  ;;  %s157_s6 = sand.u32 (!%p135_p10), 1, %s848_s10  }
   0xf   : > { %138 = sbr.rel (%p135_p10) target bundleno = 294 (0x126), region = 28  ;;  %s993_s7 = scalar_lea.vmem (!%p135_p10), [#allocation2], %s157_s6 }
  0x10   : > { %s534_s16 = scalar_lea.hbm (!%p135_p10), %s1043_s2, %s856_s12  ;;  %s536_s18 = sshll.u32 (!%p135_p10), %s993_s7, 4  ;;  %s537_s18 = int_to_ptr.vmem [resolvable:$true] %s536_s18 }
  0x11   : > { %s538_s20 = sshll.u32 (!%p135_p10), %s534_s16, 4  ;;  %s526_s23 = scalar_lea.sflag (!%p135_p10), [#allocation3], %s157_s6  ;;  %s539_s20 = int_to_ptr.hbm [resolvable:$true] %s538_s20 }
  0x12   : > { %s800_s24 = sshra.s32 (!%p135_p10), %s539_s20, 4  ;;  %s801_s24 = int_to_ptr.hbm [resolvable:$true] %s800_s24 }
  0x13   : > { %s802_s25 = scalar_lea.hbm (!%p135_p10), %s801_s24, 1  ;;  %p807_p1 = scmp.lt.s32.totalorder (!%p135_p10), %s801_s24, %s1043_s2 }
  0x14   : > { %v684_v0 = vld [vmem:[%s1042_s1 + $0x8] sm:$0xf]  ;;  %v722_v1 = vld [vmem:[%s1042_s1 + $0x8] sm:$0x30]  ;;  %vm351_vm0 = vcmask 1044480   ;;  %vm352_vm1 = vcmask 1045504   ;;  %p803_p12 = scmp.ne.s32.totalorder %s801_s24, %s802_s25 }
  0x15   : > { %v685_v2 = vor.u32 %v722_v1, %v684_v0  ;;  %v866_v3 = vmov 65535   ;;  %s161_s27 = scalar_select %p160_p11, %s856_s12, 1  ;;  %v721_v7 = vld [vmem:[%s1042_s1] sm:$0xff]  ;;  %vm302_vm2 = vcmask 220160  }
  0x16   : > { %v353_v4 = vsel %vm351_vm0, 4294967295, %v866_v3  ;;  %p804_p13 = pnand %p803_p12, %p923_p4  ;;  %s806_s12 = scalar_lea.hbm %s1043_s2, 2 }
  0x17   : > { %v354_v5 = vsel %vm352_vm1, %v353_v4, 0  ;;  %s704_s28 = sshll.u32 %s161_s27, 7  ;;  %p808_p2 = scmp.lt.s32.totalorder %s806_s12, %s802_s25 }
  0x18   : > { %v356_v6 = vand.u32 %v685_v2, %v354_v5  ;;  %s952_s5 = scalar_lea.vmem %s1041_s0, %s704_s28  ;;  %p805_p0 = pneg %p804_p13 }
  0x19   : > { %v705_v8 = vld [vmem:[%s952_s5] sm:$0xff]  ;;  %v706_v12 = vld [vmem:[%s952_s5 + $0x8] sm:$0xff]  ;;  %v707_v16 = vld [vmem:[%s952_s5 + $0x10] sm:$0xff]  ;;  %p809_p3 = por %p808_p2, %p807_p1 }
  0x1a   : > { %364 = vmatpush.bf16.msra.mxu0 %v356_v6  ;;  %723 = vmatpush.bf16.msra.mxu1 %v356_v6  ;;  %v709_v9 = vld [vmem:[%s952_s5 + $0x20] sm:$0xff]  ;;  %v710_v13 = vld [vmem:[%s952_s5 + $0x28] sm:$0xff]  ;;  %v711_v17 = vld [vmem:[%s952_s5 + $0x30] sm:$0xff] }
  0x1b   : > { %724 = vmatpush.bf16.msra.mxu2 %v356_v6  ;;  %725 = vmatpush.bf16.msra.mxu3 %v356_v6  ;;  %v713_v10 = vld [vmem:[%s952_s5 + $0x40] sm:$0xff]  ;;  %v714_v14 = vld [vmem:[%s952_s5 + $0x48] sm:$0xff]  ;;  %v715_v18 = vld [vmem:[%s952_s5 + $0x50] sm:$0xff]  ;;  %p810_p5 = pnand %p809_p3, %p805_p0 }
  0x1c   : > { %v717_v11 = vld [vmem:[%s952_s5 + $0x60] sm:$0xff]  ;;  %v718_v15 = vld [vmem:[%s952_s5 + $0x68] sm:$0xff]  ;;  %v719_v19 = vld [vmem:[%s952_s5 + $0x70] sm:$0xff] }
  0x1d   : > { %v708_v20 = vld [vmem:[%s952_s5 + $0x18] sm:$0xff] }
  0x1e   : > { %365 = vmatpush.bf16.msra.mxu0 %v721_v7  ;;  %726 = vmatpush.bf16.msra.mxu1 %v721_v7  ;;  %v712_v21 = vld [vmem:[%s952_s5 + $0x38] sm:$0xff] }
  0x1f   : > { %727 = vmatpush.bf16.msra.mxu2 %v721_v7  ;;  %728 = vmatpush.bf16.msra.mxu3 %v721_v7  ;;  %v716_v22 = vld [vmem:[%s952_s5 + $0x58] sm:$0xff] }
  0x20   : > { %v720_v23 = vld [vmem:[%s952_s5 + $0x78] sm:$0xff] }
  0x21   : > { %686 = vmatmul.msk.bf16.vlgmr.msra.gmra.mxu0 %vm302_vm2, %v705_v8  ;;  %690 = vmatmul.msk.bf16.vlgmr.msra.gmra.mxu1 %vm302_vm2, %v709_v9 }
  0x22   : > { %694 = vmatmul.msk.bf16.vlgmr.msra.gmra.mxu2 %vm302_vm2, %v713_v10  ;;  %698 = vmatmul.msk.bf16.vlgmr.msra.gmra.mxu3 %vm302_vm2, %v717_v11 }
  0x31   : > { %687 = vmatmul.msk.bf16.gmra.mxu0 %vm302_vm2, %v706_v12  ;;  %691 = vmatmul.msk.bf16.gmra.mxu1 %vm302_vm2, %v710_v13 }
  0x32   : > { %695 = vmatmul.msk.bf16.gmra.mxu2 %vm302_vm2, %v714_v14  ;;  %699 = vmatmul.msk.bf16.gmra.mxu3 %vm302_vm2, %v718_v15 }
  0x41   : > { %688 = vmatmul.msk.bf16.gmra.mxu0 %vm302_vm2, %v707_v16  ;;  %692 = vmatmul.msk.bf16.gmra.mxu1 %vm302_vm2, %v711_v17 }
  0x42   : > { %696 = vmatmul.msk.bf16.gmra.mxu2 %vm302_vm2, %v715_v18  ;;  %700 = vmatmul.msk.bf16.gmra.mxu3 %vm302_vm2, %v719_v19 }
  0x51   : > { %689 = vmatmul.msk.bf16.gmra.mxu0 %vm302_vm2, %v708_v20  ;;  %693 = vmatmul.msk.bf16.gmra.mxu1 %vm302_vm2, %v712_v21 }
  0x52   : > { %697 = vmatmul.msk.bf16.gmra.mxu2 %vm302_vm2, %v716_v22  ;;  %701 = vmatmul.msk.bf16.gmra.mxu3 %vm302_vm2, %v720_v23 }
  0x9e   : > { %v367_v24 = vpop.f32.mrf.mxu0  ;;  %v387_v25 = vpop.f32.mrf.mxu1 }
  0x9f   : > { %v447_v41 = vmax.f32 %v367_v24, 0.0  ;;  %v455_v60 = vmax.f32 %v387_v25, 0.0 }
  0xa5   : > { %v407_v29 = vpop.f32.mrf.mxu2  ;;  %v986_v35 = vpop.f32.mrf.mxu3 }
  0xa6   : > { %v369_v26 = vpop.f32.mrf.mxu0  ;;  %v389_v27 = vpop.f32.mrf.mxu1  ;;  %v463_v17 = vmax.f32 %v407_v29, 0.0 }
  0xa7   : > { %v448_v40 = vmax.f32 %v369_v26, 0.0  ;;  %v456_v63 = vmax.f32 %v389_v27, 0.0  ;;  %v867_v26 = vmov 0.0  }
  0xa8   : > { %174 = vst [vmem:[%s993_s7] sm:$0x1] %v867_v26 }
  0xa9   : > { %v479_v44 = vadd.f32 %v448_v40, %v447_v41 }
  0xad   : > { %v409_v32 = vpop.f32.mrf.mxu2  ;;  %v988_v39 = vpop.f32.mrf.mxu3 }
  0xae   : > { %v372_v28 = vpop.f32.mrf.mxu0  ;;  %v392_v30 = vpop.f32.mrf.mxu1  ;;  %v464_v20 = vmax.f32 %v409_v32, 0.0 }
  0xaf   : > { %v449_v42 = vmax.f32 %v372_v28, 0.0  ;;  %v457_v2 = vmax.f32 %v392_v30, 0.0 }
  0xb1   : > { %v480_v47 = vadd.f32 %v479_v44, %v449_v42  ;;  %v472_v42 = vmax.f32 %v988_v39, 0.0 }
  0xb5   : > { %v412_v36 = vpop.f32.mrf.mxu2  ;;  %v432_v52 = vpop.f32.mrf.mxu3 }
  0xb6   : > { %v374_v31 = vpop.f32.mrf.mxu0  ;;  %v394_v33 = vpop.f32.mrf.mxu1  ;;  %v465_v22 = vmax.f32 %v412_v36, 0.0  ;;  %v471_v36 = vmax.f32 %v986_v35, 0.0  ;;  %v473_v44 = vmax.f32 %v432_v52, 0.0 }
  0xb7   : > { %v450_v45 = vmax.f32 %v374_v31, 0.0  ;;  %v458_v4 = vmax.f32 %v394_v33, 0.0 }
  0xb9   : > { %v481_v50 = vadd.f32 %v480_v47, %v450_v45 }
  0xbd   : > { %v414_v43 = vpop.f32.mrf.mxu2  ;;  %v434_v1 = vpop.f32.mrf.mxu3 }
  0xbe   : > { %v377_v34 = vpop.f32.mrf.mxu0  ;;  %v397_v38 = vpop.f32.mrf.mxu1  ;;  %v466_v24 = vmax.f32 %v414_v43, 0.0 }
  0xbf   : > { %v451_v48 = vmax.f32 %v377_v34, 0.0  ;;  %v459_v7 = vmax.f32 %v397_v38, 0.0 }
  0xc1   : > { %v482_v53 = vadd.f32 %v481_v50, %v451_v48 }
  0xc5   : > { %v417_v57 = vpop.f32.mrf.mxu2  ;;  %v437_v14 = vpop.f32.mrf.mxu3 }
  0xc6   : > { %v379_v37 = vpop.f32.mrf.mxu0  ;;  %v399_v49 = vpop.f32.mrf.mxu1  ;;  %v467_v28 = vmax.f32 %v417_v57, 0.0  ;;  %v475_v48 = vmax.f32 %v437_v14, 0.0 }
  0xc7   : > { %v452_v51 = vmax.f32 %v379_v37, 0.0  ;;  %v460_v9 = vmax.f32 %v399_v49, 0.0 }
  0xc9   : > { %v483_v55 = vadd.f32 %v482_v53, %v452_v51 }
  0xcd   : > { %v419_v6 = vpop.f32.mrf.mxu2  ;;  %v439_v27 = vpop.f32.mrf.mxu3 }
  0xce   : > { %v382_v46 = vpop.f32.mrf.mxu0  ;;  %v402_v62 = vpop.f32.mrf.mxu1  ;;  %v468_v31 = vmax.f32 %v419_v6, 0.0  ;;  %v476_v50 = vmax.f32 %v439_v27, 0.0 }
  0xcf   : > { %v453_v54 = vmax.f32 %v382_v46, 0.0  ;;  %v461_v12 = vmax.f32 %v402_v62, 0.0  ;;  %v474_v46 = vmax.f32 %v434_v1, 0.0 }
  0xd1   : > { %v484_v58 = vadd.f32 %v483_v55, %v453_v54 }
  0xd5   : > { %v422_v19 = vpop.f32.mrf.mxu2  ;;  %v442_v41 = vpop.f32.mrf.mxu3 }
  0xd6   : > { %v384_v56 = vpop.f32.mrf.mxu0  ;;  %v404_v11 = vpop.f32.mrf.mxu1  ;;  %v469_v37 = vmax.f32 %v422_v19, 0.0  ;;  %v477_v35 = vmax.f32 %v442_v41, 0.0 }
  0xd7   : > { %v454_v59 = vmax.f32 %v384_v56, 0.0  ;;  %v462_v16 = vmax.f32 %v404_v11, 0.0 }
  0xd9   : > { %v485_v61 = vadd.f32 %v484_v58, %v454_v59 }
  0xdb   : > { %v486_v0 = vadd.f32 %v485_v61, %v455_v60  ;;  %v516_v61 = vld [vmem:[%s993_s7] sm:$0x1] }
  0xdd   : > { %v487_v3 = vadd.f32 %v486_v0, %v456_v63  ;;  %v424_v33 = vpop.f32.mrf.mxu2  ;;  %v444_v53 = vpop.f32.mrf.mxu3 }
  0xde   : > { %v470_v38 = vmax.f32 %v424_v33, 0.0  ;;  %v478_v56 = vmax.f32 %v444_v53, 0.0 }
  0xdf   : > { %v488_v5 = vadd.f32 %v487_v3, %v457_v2 }
  0xe1   : > { %v489_v8 = vadd.f32 %v488_v5, %v458_v4 }
  0xe3   : > { %v490_v10 = vadd.f32 %v489_v8, %v459_v7 }
  0xe5   : > { %v491_v13 = vadd.f32 %v490_v10, %v460_v9 }
  0xe7   : > { %v492_v15 = vadd.f32 %v491_v13, %v461_v12 }
  0xe9   : > { %v493_v18 = vadd.f32 %v492_v15, %v462_v16 }
  0xeb   : > { %v494_v21 = vadd.f32 %v493_v18, %v463_v17 }
  0xed   : > { %v495_v23 = vadd.f32 %v494_v21, %v464_v20 }
  0xef   : > { %v496_v25 = vadd.f32 %v495_v23, %v465_v22 }
  0xf1   : > { %v497_v30 = vadd.f32 %v496_v25, %v466_v24 }
  0xf3   : > { %v498_v29 = vadd.f32 %v497_v30, %v467_v28 }
  0xf5   : > { %v499_v34 = vadd.f32 %v498_v29, %v468_v31 }
  0xf7   : > { %v500_v32 = vadd.f32 %v499_v34, %v469_v37 }
  0xf9   : > { %v501_v40 = vadd.f32 %v500_v32, %v470_v38 }
  0xfb   : > { %v502_v43 = vadd.f32 %v501_v40, %v471_v36 }
  0xfd   : > { %v503_v45 = vadd.f32 %v502_v43, %v472_v42 }
  0xff   : > { %v504_v47 = vadd.f32 %v503_v45, %v473_v44 }
 0x101   : > { %v505_v49 = vadd.f32 %v504_v47, %v474_v46 }
 0x103   : > { %v506_v51 = vadd.f32 %v505_v49, %v475_v48 }
 0x105   : > { %v507_v54 = vadd.f32 %v506_v51, %v476_v50 }
 0x107   : > { %v508_v55 = vadd.f32 %v507_v54, %v477_v35 }
 0x109   : > { %v509_v39 = vadd.f32 %v508_v55, %v478_v56 }
 0x10b   : > { %v510_v57 = vrot.slane %v509_v39, 4 }
 0x10d   : > { %v511_v52 = vadd.f32 %v510_v57, %v509_v39 }
 0x10f   : > { %v512_v58 = vrot.slane %v511_v52, 2 }
 0x111   : > { %v513_v59 = vadd.f32 %v512_v58, %v511_v52 }
 0x113   : > { %v514_v60 = vrot.slane %v513_v59, 1 }
 0x115   : > { %v515_v62 = vadd.f32 %v514_v60, %v513_v59 }
 0x117   : > { %v517_v63 = vadd.f32 %v516_v61, %v515_v62 }
 0x119   : > { %518 = vst [vmem:[%s993_s7] sm:$0x1] %v517_v63 }
 0x120   : > { %v522_v0 = vld [vmem:[%s993_s7] sm:$0x1] }
 0x121   : > { %v523_v1 = vmul.f32 0.00390625, %v522_v0 }
 0x123   : > { %524 = vst [vmem:[%s993_s7] sm:$0x1] %v523_v1 }
 0x124   : > { %813 = shalt.err (!%p810_p5)
}
 0x125   : > { %729 = dma.vmem_to_hbm [thread:$0]  (%p923_p4), %s537_s18, 16, %s539_s20, %s526_s23  }
 0x126 PF: > { %p735_p6 = scmp.ge.s32.totalorder %s864_s14, 2  ;;  %s550_s30 = sand.u32 1, %s844_s9  }
 0x127   : > { %s551_s3 = scalar_lea.sflag [#allocation3], %s550_s30 }
 0x128   : > { %p732_p7 = pnand %p735_p6, %p930_p8 }
 0x12a   : > { %p733_p9 = pneg %p732_p7 }
 0x12c   : > { %839 = dma.done.wait (%p733_p9), %s551_s3, 16  }
 0x12d   : > { %841 = vsyncadd (%p733_p9), %s551_s3, 4294967280  ;;  %s15_s14 = sadd.s32 1, %s864_s14   ;;  %s1046_s9 = smov %s848_s10 }
 0x12e   : > { %p12_p10 = scmp.ge.s32.totalorder %s15_s14, 4   ;;  %s1047_s10 = smov %s852_s11 }
 0x12f   : > { %s1048_s11 = smov %s936_s22  ;;  %s1049_s12 = smov %s860_s13 }
 0x130   : > { %s1050_s13 = smov %s1052_s17  ;;  %14 = sbr.rel (!%p12_p10) target bundleno = 4 (0x4), region = 71 }
 0x135   :  { %556 = vsyncpa [#allocation3], 1 }
 0x136   :  { %558 = vsyncpa [#allocation3 + $0x1], 1 }

</bundles_post_ra>
